<compile_context>
chip_gen: v7x
topology: tpu7x:2x2x1
jax: 0.10.0
libtpu: 0.0.40
codegen_flags: <defaults>
</compile_context>

<pallas_src>
import functools

import jax
import jax.numpy as jnp
from jax.experimental import pallas as pl
from jax.experimental.pallas import tpu as pltpu


_LANE = 128
# ~2 MiB per tile; with double-buffered input + output that is ~8 MiB of VMEM.
_TILE_TARGET_BYTES = 2 * 1024 * 1024


def _clamp_kernel(x_ref, o_ref, *, lo, hi):
    # lo/hi are Python constants -> become immediates in the VLIW bundle.
    x = x_ref[...]
    o_ref[...] = jnp.minimum(jnp.maximum(x, lo), hi)


def _choose_cols(total):
    """Largest lane-dense width (multiple of 128) that divides `total` exactly."""
    for c in (4096, 2048, 1024, 512, 256, _LANE):
        if total % c == 0:
            return c, False
    return _LANE, True  # needs a padded tail (total not a multiple of 128)


def _choose_tile_rows(rows, cols, itemsize):
    """Pick a row-tile height: ~2 MiB tiles, multiple of 32 rows (dtype packing)."""
    tr = max(1, _TILE_TARGET_BYTES // (cols * itemsize))
    if tr >= rows:
        return rows  # single row-tile: full dim is exempt from the (8,128) rule
    tr = max(32, (tr // 32) * 32)
    return min(tr, rows)


def clamp_pallas(x, min_val=-1.0, max_val=1.0):
    """Elementwise clamp via a tiled, lane-dense Pallas TPU kernel."""
    orig_shape = x.shape
    orig_dtype = x.dtype
    total = x.size
    if total == 0:
        return x

    cols, needs_pad = _choose_cols(total)
    if needs_pad:
        # Rare path: pad the flat view up to a 128-lane boundary (<=127 elems).
        padded = pl.cdiv(total, cols) * cols
        flat = jnp.pad(x.reshape(-1), (0, padded - total))
    else:
        padded = total
        flat = x.reshape(-1)

    rows = padded // cols
    x2 = flat.reshape(rows, cols)

    tile_r = _choose_tile_rows(rows, cols, x2.dtype.itemsize)
    grid = (pl.cdiv(rows, tile_r),)

    kernel = functools.partial(_clamp_kernel, lo=min_val, hi=max_val)

    out2 = pl.pallas_call(
        kernel,
        out_shape=jax.ShapeDtypeStruct((rows, cols), orig_dtype),
        grid=grid,
        in_specs=[pl.BlockSpec((tile_r, cols), lambda i: (i, 0))],
        out_specs=pl.BlockSpec((tile_r, cols), lambda i: (i, 0)),
        compiler_params=pltpu.CompilerParams(
            dimension_semantics=("parallel",),  # independent tiles; shards over v7x's 2 TCs
        ),
    )(x2)

    out_flat = out2.reshape(-1)
    if needs_pad:
        out_flat = out_flat[:total]
    return out_flat.reshape(orig_shape)


if __name__ == "__main__":
    key = jax.random.PRNGKey(0)

    # NCHW like the PyTorch module would receive: batch=2, channels=4, 16x16.
    x = jax.random.normal(key, (2, 4, 16, 16), dtype=jnp.float32) * 3.0
    y = jax.block_until_ready(clamp_pallas(x, min_val=-1.0, max_val=1.0))
    y_ref = jnp.clip(x, -1.0, 1.0)
    assert y.shape == x.shape and y.dtype == x.dtype
    assert jnp.allclose(y, y_ref), "mismatch vs reference clamp (small NCHW)"

    # Exercise the multi-tile grid path (rows > tile_r -> grid > 1).
    k2 = jax.random.PRNGKey(1)
    x_big = jax.random.normal(k2, (2, 4, 256, 512), dtype=jnp.float32) * 3.0
    y_big = jax.block_until_ready(clamp_pallas(x_big, min_val=-0.5, max_val=0.5))
    assert jnp.allclose(y_big, jnp.clip(x_big, -0.5, 0.5)), "mismatch (tiled path)"

    # Exercise the padded-tail path (element count not a multiple of 128).
    k3 = jax.random.PRNGKey(2)
    x_odd = jax.random.normal(k3, (3, 5, 7, 11), dtype=jnp.float32) * 3.0
    y_odd = jax.block_until_ready(clamp_pallas(x_odd, min_val=-1.0, max_val=1.0))
    assert jnp.allclose(y_odd, jnp.clip(x_odd, -1.0, 1.0)), "mismatch (padded path)"

    print("KERNEL_OK")
</pallas_src>

<mosaic_0001>
module attributes {stable_mosaic.version = 11 : i64} {
  func.func @_clamp_kernel(%arg0: i32, %arg1: memref<1x2048xf32, #tpu.memory_space<vmem>>, %arg2: memref<1x2048xf32, #tpu.memory_space<vmem>>) attributes {dimension_semantics = [#tpu.dimension_semantics<parallel>], iteration_bounds = array<i64: 1>, scalar_prefetch = 0 : i64, scratch_operands = 0 : i64, tpu.core_type = #tpu.core_type<tc>, window_params = [{transform_indices = @transform_0, window_bounds = array<i64: 1, 2048>}, {transform_indices = @transform_1, window_bounds = array<i64: 1, 2048>}]} {
    %c0 = arith.constant 0 : index
    %c0_0 = arith.constant 0 : index
    %0 = vector.load %arg1[%c0, %c0_0] : memref<1x2048xf32, #tpu.memory_space<vmem>>, vector<1x2048xf32>
    %cst = arith.constant -1.000000e+00 : f32
    %1 = vector.broadcast %cst : f32 to vector<1x2048xf32>
    %2 = arith.maximumf %0, %1 : vector<1x2048xf32>
    %cst_1 = arith.constant 1.000000e+00 : f32
    %3 = vector.broadcast %cst_1 : f32 to vector<1x2048xf32>
    %4 = arith.minimumf %2, %3 : vector<1x2048xf32>
    %c0_2 = arith.constant 0 : index
    %c0_3 = arith.constant 0 : index
    %5 = vector.load %arg2[%c0_2, %c0_3] : memref<1x2048xf32, #tpu.memory_space<vmem>>, vector<1x2048xf32>
    tpu.vector_store %arg2[%c0_2, %c0_3], %4 {strides = array<i32>} : memref<1x2048xf32, #tpu.memory_space<vmem>>, vector<1x2048xf32>,
    return
  }
  func.func @transform_0(%arg0: i32) -> (i32, i32) {
    %c0_i32 = arith.constant 0 : i32
    %c0_i32_0 = arith.constant 0 : i32
    return %arg0, %c0_i32 : i32, i32
  }
  func.func @transform_1(%arg0: i32) -> (i32, i32) {
    %c0_i32 = arith.constant 0 : i32
    %c0_i32_0 = arith.constant 0 : i32
    return %arg0, %c0_i32 : i32, i32
  }
}

</mosaic_0001>

<bundles_post_ra>
// kernel: tpu_custom_call.1
= control target key start
LH: loop header
LB: loop body
LE: loop exit
PB: predicated region body
PF: predicated region fallthrough
CT: control target
= control target key end

     0   :  { %6 = vsyncpa [#allocation3], 0  ;;  %s132_s0 = inlined_call_operand.hbm [shape: f32[1,2048], index: 0, kind: input, shape index: {}]   ;;  %s133_s1 = inlined_call_operand.hbm [shape: f32[1,2048], index: 1, kind: output, shape index: {}]  }
   0x1   :  { %7 = vsyncpa [#allocation4], 0  ;;  %s96_s6 = smov [#allocation2]   ;;  %s48_s10 = scalar_lea.hbm %s132_s0, 256 }
   0x2   :  { %s14_s7 = sshll.u32 %s96_s6, 4  ;;  %p49_p0 = scmp.ne.s32.totalorder %s132_s0, %s48_s10  ;;  %s15_s7 = int_to_ptr.vmem [resolvable:$true] %s14_s7 }
   0x3   :  { %p52_p1 = scmp.lt.u32.totalorder %s48_s10, %s132_s0 }
   0x5   :  { %p54_p2 = pnand %p52_p1, %p49_p0 }
   0x7   :  { %57 = shalt.err (!%p54_p2)
}
   0x8   :  { %s58_s15 = scalar_lea.vmem %s15_s7, 256  ;;  %p63_p4 = scmp.lt.s32.totalorder %s15_s7, %s15_s7 }
   0x9   :  { %p59_p3 = scmp.ne.s32.totalorder %s15_s7, %s58_s15  ;;  %p64_p5 = scmp.lt.s32.totalorder %s58_s15, %s58_s15 }
   0xb   :  { %p65_p6 = por %p64_p5, %p63_p4 }
   0xd   :  { %p66_p7 = pnand %p65_p6, %p59_p3 }
   0xf   :  { %69 = shalt.err (!%p66_p7)
}
  0x10   :  { %17 = dma.hbm_to_vmem [thread:$0]  %s132_s0, 256, %s15_s7, [#allocation3]  }
  0x11   :  { %92 = dma.done.wait [#allocation3], 256  }
  0x12   :  { %93 = vsyncadd [#allocation3], 4294967040  ;;  %s97_s18 = smov [#allocation5]   ;;  %v21_v0 = vld [vmem:[#allocation2] sm:$0xff]  ;;  %v22_v1 = vld [vmem:[#allocation2 + $0x8] sm:$0xff] }
  0x13   :  { %s35_s19 = sshll.u32 %s97_s18, 4  ;;  %v44_v2 = vclamps-f32 %v21_v0, 1.0  ;;  %v45_v3 = vclamps-f32 %v22_v1, 1.0  ;;  %s36_s19 = int_to_ptr.vmem [resolvable:$true] %s35_s19 }
  0x14   :  { %s70_s20 = scalar_lea.vmem %s36_s19, 256  ;;  %p75_p9 = scmp.lt.s32.totalorder %s36_s19, %s36_s19 }
  0x15   :  { %27 = vst [vmem:[#allocation5] sm:$0xff] %v44_v2  ;;  %28 = vst [vmem:[#allocation5 + $0x8] sm:$0xff] %v45_v3  ;;  %p71_p8 = scmp.ne.s32.totalorder %s36_s19, %s70_s20  ;;  %p76_p10 = scmp.lt.s32.totalorder %s70_s20, %s70_s20 }
  0x17   :  { %p77_p11 = por %p76_p10, %p75_p9 }
  0x19   :  { %p78_p12 = pnand %p77_p11, %p71_p8 }
  0x1b   :  { %81 = shalt.err (!%p78_p12)
}
  0x1c   :  { %s82_s22 = scalar_lea.hbm %s133_s1, 256 }
  0x1d   :  { %p83_p13 = scmp.ne.s32.totalorder %s133_s1, %s82_s22  ;;  %p86_p0 = scmp.lt.u32.totalorder %s82_s22, %s133_s1 }
  0x1f   :  { %p88_p1 = pnand %p86_p0, %p83_p13 }
  0x21   :  { %91 = shalt.err (!%p88_p1)
}
  0x22   :  { %38 = dma.vmem_to_hbm [thread:$0]  %s36_s19, 256, %s133_s1, [#allocation4]  }
  0x23   :  { %94 = dma.done.wait [#allocation4], 256  }
  0x24   :  { %95 = vsyncadd [#allocation4], 4294967040 }
  0x25   :  { %42 = vsyncpa [#allocation3], 1 }
  0x26   :  { %43 = vsyncpa [#allocation4], 1 }

</bundles_post_ra>
